<compile_context>
chip_gen: v7x
topology: tpu7x:2x2x1
jax: 0.10.0
libtpu: 0.0.40
codegen_flags: <defaults>
</compile_context>

<pallas_src>
import jax
import jax.numpy as jnp
from jax.experimental import pallas as pl
from jax.experimental.pallas import tpu as pltpu


def _complex_mul_kernel(xr_ref, xi_ref, wr_ref, wi_ref, or_ref, oi_ref):
    a = xr_ref[...]
    b = xi_ref[...]
    c = wr_ref[...]
    d = wi_ref[...]
    # (a + ib) * (c + id) = (ac - bd) + i(ad + bc)
    or_ref[...] = a * c - b * d
    oi_ref[...] = a * d + b * c


def _pick_row_tile(M: int, N: int, vmem_cap_bytes: int) -> int:
    """Largest multiple-of-8 row tile such that all double-buffered planes fit VMEM."""
    # 6 f32 planes (4 inputs + 2 outputs), each double-buffered by the pipeline.
    bytes_per_row = 12 * N * 4
    budget = int(vmem_cap_bytes * 0.6)          # headroom for scratch / metadata
    tm = max(8, (budget // bytes_per_row) // 8 * 8)
    tm = min(tm, 2048)                          # diminishing returns past ~2k rows
    if M > 8:
        # Keep >= 2 grid blocks so v7x's two TensorCores both participate.
        half = -(-M // 2)                       # ceil(M / 2)
        half_up = -(-half // 8) * 8             # round up to multiple of 8
        tm = min(tm, max(8, half_up))
    else:
        tm = 8
    return tm


def input_dummy_layer_planar(xr, xi, wr, wi):
    """Fast path: elementwise complex multiply on planar (re, im) f32 planes.

    All four inputs are (M, N) float32; returns (out_r, out_i) float32 planes.
    No complex<->planar conversion happens anywhere near the kernel.
    """
    assert xr.shape == xi.shape == wr.shape == wi.shape and xr.ndim == 2
    M, N = xr.shape

    try:
        vmem_cap = pltpu.get_tpu_info().vmem_capacity_bytes
    except Exception:
        vmem_cap = 64 << 20  # v7x per-TensorCore VMEM; safe lower bound for all gens

    tm = _pick_row_tile(M, N, vmem_cap)
    grid = (pl.cdiv(M, tm),)
    spec = pl.BlockSpec((tm, N), lambda i: (i, 0))

    # Raise the scoped-VMEM limit so the large tile actually compiles, but stay
    # under physical capacity (matters most on v7x's 64 MiB).
    vmem_limit = min(vmem_cap, max(32 << 20, 12 * tm * N * 4 + (8 << 20)))

    cost = pl.CostEstimate(
        flops=6 * M * N,           # 4 mul + 2 add per complex element
        transcendentals=0,
        bytes_accessed=24 * M * N,  # 4 in + 2 out f32 planes
    )

    out_r, out_i = pl.pallas_call(
        _complex_mul_kernel,
        out_shape=(
            jax.ShapeDtypeStruct((M, N), jnp.float32),
            jax.ShapeDtypeStruct((M, N), jnp.float32),
        ),
        grid_spec=pltpu.PrefetchScalarGridSpec(
            num_scalar_prefetch=0,
            grid=grid,
            in_specs=[spec, spec, spec, spec],
            out_specs=[spec, spec],
        ),
        compiler_params=pltpu.CompilerParams(
            dimension_semantics=("parallel",),
            vmem_limit_bytes=vmem_limit,
        ),
        cost_estimate=cost,
    )(
        xr.astype(jnp.float32),
        xi.astype(jnp.float32),
        wr.astype(jnp.float32),
        wi.astype(jnp.float32),
    )
    return out_r, out_i


def input_dummy_layer(x: jnp.ndarray, weights: jnp.ndarray) -> jnp.ndarray:
    """Module-compatible wrapper: complex (M, N) in, complex (squeezed) out.

    NOTE: the real/imag split and complex recombine here are extra HBM passes
    outside the kernel; in a real pipeline keep planar storage and call
    input_dummy_layer_planar directly.
    """
    assert x.shape == weights.shape and x.ndim == 2
    out_r, out_i = input_dummy_layer_planar(
        jnp.real(x), jnp.imag(x), jnp.real(weights), jnp.imag(weights)
    )
    out = jax.lax.complex(out_r, out_i)
    # PyTorch branch: 2-D input -> output.squeeze()
    return jnp.squeeze(out)


if __name__ == "__main__":
    # Small 2-D "incident field" (M x N) and deterministic phase-delay weights.
    M, N = 16, 128
    key = jax.random.PRNGKey(0)
    k1, k2, k3, k4 = jax.random.split(key, 4)

    # Native planar storage (the fast-path format).
    xr = jax.random.normal(k1, (M, N), dtype=jnp.float32)
    xi = jax.random.normal(k2, (M, N), dtype=jnp.float32)
    phase = jax.random.uniform(k3, (M, N), dtype=jnp.float32, maxval=2.0 * jnp.pi)
    amp = 1.0 + 0.1 * jax.random.normal(k4, (M, N), dtype=jnp.float32)
    wr = amp * jnp.cos(phase)
    wi = amp * jnp.sin(phase)

    # 1) Fast planar path (no complex<->planar conversion around the kernel).
    out_r, out_i = jax.block_until_ready(input_dummy_layer_planar(xr, xi, wr, wi))

    # 2) Module-compatible complex path (matches InputLDummyLayer.forward).
    x = jax.lax.complex(xr, xi)
    w = jax.lax.complex(wr, wi)
    out_c = jax.block_until_ready(input_dummy_layer(x, w))

    # Reference check in plain JAX.
    ref_full = x * w
    ref = jnp.squeeze(ref_full)
    assert out_c.shape == ref.shape
    assert jnp.allclose(out_c, ref, atol=1e-5, rtol=1e-5)
    assert jnp.allclose(jax.lax.complex(out_r, out_i), ref_full, atol=1e-5, rtol=1e-5)

    print("KERNEL_OK")
</pallas_src>

<mosaic_0001>
module attributes {stable_mosaic.version = 11 : i64} {
  func.func @_complex_mul_kernel(%arg0: i32, %arg1: memref<8x128xf32, #tpu.memory_space<vmem>>, %arg2: memref<8x128xf32, #tpu.memory_space<vmem>>, %arg3: memref<8x128xf32, #tpu.memory_space<vmem>>, %arg4: memref<8x128xf32, #tpu.memory_space<vmem>>, %arg5: memref<8x128xf32, #tpu.memory_space<vmem>>, %arg6: memref<8x128xf32, #tpu.memory_space<vmem>>) attributes {dimension_semantics = [#tpu.dimension_semantics<parallel>], iteration_bounds = array<i64: 2>, scalar_prefetch = 0 : i64, scratch_operands = 0 : i64, tpu.core_type = #tpu.core_type<tc>, window_params = [{transform_indices = @transform_0, window_bounds = array<i64: 8, 128>}, {transform_indices = @transform_1, window_bounds = array<i64: 8, 128>}, {transform_indices = @transform_2, window_bounds = array<i64: 8, 128>}, {transform_indices = @transform_3, window_bounds = array<i64: 8, 128>}, {transform_indices = @transform_4, window_bounds = array<i64: 8, 128>}, {transform_indices = @transform_5, window_bounds = array<i64: 8, 128>}]} {
    %c0 = arith.constant 0 : index
    %c0_0 = arith.constant 0 : index
    %0 = vector.load %arg1[%c0, %c0_0] : memref<8x128xf32, #tpu.memory_space<vmem>>, vector<8x128xf32>
    %c0_1 = arith.constant 0 : index
    %c0_2 = arith.constant 0 : index
    %1 = vector.load %arg2[%c0_1, %c0_2] : memref<8x128xf32, #tpu.memory_space<vmem>>, vector<8x128xf32>
    %c0_3 = arith.constant 0 : index
    %c0_4 = arith.constant 0 : index
    %2 = vector.load %arg3[%c0_3, %c0_4] : memref<8x128xf32, #tpu.memory_space<vmem>>, vector<8x128xf32>
    %c0_5 = arith.constant 0 : index
    %c0_6 = arith.constant 0 : index
    %3 = vector.load %arg4[%c0_5, %c0_6] : memref<8x128xf32, #tpu.memory_space<vmem>>, vector<8x128xf32>
    %4 = arith.mulf %0, %2 : vector<8x128xf32>
    %5 = arith.mulf %1, %3 : vector<8x128xf32>
    %6 = arith.subf %4, %5 : vector<8x128xf32>
    %c0_7 = arith.constant 0 : index
    %c0_8 = arith.constant 0 : index
    %7 = vector.load %arg5[%c0_7, %c0_8] : memref<8x128xf32, #tpu.memory_space<vmem>>, vector<8x128xf32>
    tpu.vector_store %arg5[%c0_7, %c0_8], %6 {strides = array<i32>} : memref<8x128xf32, #tpu.memory_space<vmem>>, vector<8x128xf32>,
    %8 = arith.mulf %0, %3 : vector<8x128xf32>
    %9 = arith.mulf %1, %2 : vector<8x128xf32>
    %10 = arith.addf %8, %9 : vector<8x128xf32>
    %c0_9 = arith.constant 0 : index
    %c0_10 = arith.constant 0 : index
    %11 = vector.load %arg6[%c0_9, %c0_10] : memref<8x128xf32, #tpu.memory_space<vmem>>, vector<8x128xf32>
    tpu.vector_store %arg6[%c0_9, %c0_10], %10 {strides = array<i32>} : memref<8x128xf32, #tpu.memory_space<vmem>>, vector<8x128xf32>,
    return
  }
  func.func @transform_0(%arg0: i32) -> (i32, i32) {
    %c0_i32 = arith.constant 0 : i32
    %c0_i32_0 = arith.constant 0 : i32
    return %arg0, %c0_i32 : i32, i32
  }
  func.func @transform_1(%arg0: i32) -> (i32, i32) {
    %c0_i32 = arith.constant 0 : i32
    %c0_i32_0 = arith.constant 0 : i32
    return %arg0, %c0_i32 : i32, i32
  }
  func.func @transform_2(%arg0: i32) -> (i32, i32) {
    %c0_i32 = arith.constant 0 : i32
    %c0_i32_0 = arith.constant 0 : i32
    return %arg0, %c0_i32 : i32, i32
  }
  func.func @transform_3(%arg0: i32) -> (i32, i32) {
    %c0_i32 = arith.constant 0 : i32
    %c0_i32_0 = arith.constant 0 : i32
    return %arg0, %c0_i32 : i32, i32
  }
  func.func @transform_4(%arg0: i32) -> (i32, i32) {
    %c0_i32 = arith.constant 0 : i32
    %c0_i32_0 = arith.constant 0 : i32
    return %arg0, %c0_i32 : i32, i32
  }
  func.func @transform_5(%arg0: i32) -> (i32, i32) {
    %c0_i32 = arith.constant 0 : i32
    %c0_i32_0 = arith.constant 0 : i32
    return %arg0, %c0_i32 : i32, i32
  }
}

</mosaic_0001>

<bundles_post_ra>
// kernel: tpu_custom_call.1
= control target key start
LH: loop header
LB: loop body
LE: loop exit
PB: predicated region body
PF: predicated region fallthrough
CT: control target
= control target key end

     0   :  { %s1221_s0 = inlined_call_operand.hbm [shape: f32[16,128], index: 0, kind: input, shape index: {}]   ;;  %s1222_s1 = inlined_call_operand.hbm [shape: f32[16,128], index: 1, kind: input, shape index: {}]   ;;  %s1223_s2 = inlined_call_operand.hbm [shape: f32[16,128], index: 2, kind: input, shape index: {}]   ;;  %s1224_s3 = inlined_call_operand.hbm [shape: f32[16,128], index: 3, kind: input, shape index: {}]   ;;  %s1225_s4 = inlined_call_operand.hbm [shape: f32[16,128], index: 4, kind: output, shape index: {0}]   ;;  %s1226_s5 = inlined_call_operand.hbm [shape: f32[16,128], index: 5, kind: output, shape index: {1}]  }
   0x1   :  { %1234 = sst [smem:[#allocation21_spill]] %s1222_s1 }
   0x2   :  { %11 = vsyncpa [#allocation3], 0 }
   0x3   :  { %13 = vsyncpa [#allocation3 + $0x1], 0 }
   0x4   :  { %14 = vsyncpa [#allocation6], 0 }
   0x5   :  { %16 = vsyncpa [#allocation6 + $0x1], 0 }
   0x6   :  { %17 = vsyncpa [#allocation9], 0 }
   0x7   :  { %19 = vsyncpa [#allocation9 + $0x1], 0 }
   0x8   :  { %20 = vsyncpa [#allocation4], 0 }
   0x9   :  { %22 = vsyncpa [#allocation4 + $0x1], 0 }
   0xa   :  { %23 = vsyncpa [#allocation12], 0 }
   0xb   :  { %25 = vsyncpa [#allocation12 + $0x1], 0  ;;  %s925_s18 = smov 0   ;;  %s927_s19 = smov 0  }
   0xc   :  { %s929_s20 = smov 0   ;;  %s931_s21 = smov 0  }
   0xd LB: > { %1235 = sst [smem:[#allocation18_spill]] %s883_s20  ;;  %s946_s22 = sadd.s32 4294967295, %s887_s21   ;;  %s887_s21 = sphi %s931_s21, %s1254_s21   ;;  %s883_s20 = sphi %s929_s20, %s1256_s20   ;;  %s879_s19 = sphi %s927_s19, %s1258_s19   ;;  %s875_s18 = sphi %s925_s18, %s1257_s18  }
   0xe   : > { %s571_s23 = sadd.s32 4294967294, %s887_s21   ;;  %s950_s24 = sadd.s32 1, %s887_s21  }
   0xf   : > { %1236 = sst [smem:[#allocation19_spill]] %s950_s24  ;;  %s38_s25 = sadd.s32 1, %s883_s20 }
  0x10   : > { %s35_s26 = ssub.s32 %s887_s21, %s950_s24  ;;  %p45_p0 = scmp.ne.s32.totalorder %s883_s20, %s879_s19 }
  0x11   : > { %p36_p1 = scmp.eq.s32.totalorder %s35_s26, 0  ;;  %p46_p2 = scmp.eq.s32.totalorder %s887_s21, 0 }
  0x12   : > { %p51_p3 = scmp.ne.s32.totalorder %s879_s19, %s875_s18  ;;  %p52_p4 = scmp.eq.s32.totalorder %s946_s22, 0 }
  0x13   : > { %s962_s27 = scalar_select %p36_p1, %s883_s20, %s38_s25  }
  0x14   : > { %p47_p5 = por %p46_p2, %p45_p0  ;;  %p964_p6 = por %p52_p4, %p51_p3 }
  0x15   : > { %1237 = sst [smem:[#allocation20_spill]] %s962_s27  ;;  %p153_p7 = scmp.eq.s32.totalorder %s946_s22, 1 }
  0x16   : > { %s1238_s28 = scalar_select %p964_p6, 1, 0 }
  0x17   : > { %p159_p8 = scmp.eq.s32.totalorder %s571_s23, 1  ;;  %p627_p10 = scmp.lt.s32.totalorder %s887_s21, 2 }
  0x18   : > { %p971_p11 = por %p153_p7, %p45_p0  ;;  %s980_s6 = sand.u32 1, %s883_s20  }
  0x19   : > { %p975_p12 = por %p159_p8, %p51_p3  ;;  %s983_s7 = sshll.u32 %s887_s21, 7 }
  0x1a   : > { %s1239_s29 = scalar_select %p971_p11, 1, 0 }
  0x1b   : > { %s1240_s30 = scalar_select %p975_p12, 1, 0 }
  0x1c   : > { %s986_s8 = sshll.u32 %s980_s6, 3  ;;  %p988_p13 = pnand %p627_p10, %p47_p5 }
  0x1d   : > { %s223_s10 = sand.u32 1, %s887_s21   ;;  %s1242_s1 = sld [smem:[#allocation21_spill]] }
  0x1e   : > { %s1241_s9 = scalar_select %p988_p13, 1, 0 }
  0x1f   : > { %s227_s14 = scalar_lea.vmem [#allocation5], %s986_s8  ;;  %s1003_s16 = scalar_lea.sflag [#allocation6], %s223_s10 }
  0x20   : > { %s234_s15 = sshll.u32 %s227_s14, 4  ;;  %p1009_p2 = pneg %p988_p13  ;;  %s1000_s15 = int_to_ptr.vmem [resolvable:$true] %s234_s15 }
  0x23   : > { %s997_s13 = scalar_lea.hbm %s1242_s1, %s983_s7  ;;  %s666_s11 = scalar_lea.hbm %s1242_s1, 256 }
  0x24   : > { %s661_s17 = scalar_lea.hbm %s997_s13, 128  ;;  %p667_p5 = scmp.lt.u32.totalorder %s997_s13, %s1242_s1 }
  0x25   : > { %p662_p1 = scmp.ne.s32.totalorder %s997_s13, %s661_s17  ;;  %p668_p7 = scmp.lt.u32.totalorder %s666_s11, %s661_s17 }
  0x26   : > { %p670_p10 = scmp.lt.u32.totalorder %s661_s17, %s997_s13 }
  0x27   : > { %p664_p3 = pnand %p1009_p2, %p662_p1  ;;  %p669_p8 = por %p668_p7, %p667_p5 }
  0x29   : > { %p665_p4 = pneg %p664_p3  ;;  %p671_p9 = por %p670_p10, %p669_p8 }
  0x2b   : > { %p672_p0 = pnand %p671_p9, %p665_p4 }
  0x2d   : > { %675 = shalt.err (!%p672_p0)
}
  0x2e   : > { %s676_s10 = scalar_lea.vmem %s1000_s15, 128  ;;  %s889_s25 = smov [#allocation5]  }
  0x2f   : > { %p677_p1 = scmp.ne.s32.totalorder %s1000_s15, %s676_s10  ;;  %s681_s26 = sshll.u32 %s889_s25, 4  ;;  %s682_s26 = int_to_ptr.vmem [resolvable:$false] %s681_s26 }
  0x30   : > { %s683_s12 = scalar_lea.vmem %s682_s26, 256  ;;  %p684_p11 = scmp.lt.s32.totalorder %s1000_s15, %s682_s26 }
  0x31   : > { %p679_p3 = pnand %p677_p1, %p1009_p2  ;;  %p685_p6 = scmp.lt.s32.totalorder %s683_s12, %s676_s10 }
  0x33   : > { %p680_p12 = pneg %p679_p3  ;;  %p686_p5 = por %p685_p6, %p684_p11 }
  0x35   : > { %p687_p7 = pnand %p686_p5, %p680_p12 }
  0x37   : > { %690 = shalt.err (!%p687_p7)
}
  0x38   : > { %613 = dma.hbm_to_vmem [thread:$0]  (!%p988_p13), %s997_s13, 128, %s1000_s15, %s1003_s16  }
  0x39   : > { %p275_p9 = scmp.lt.s32.totalorder %s887_s21, 3  ;;  %s1038_s14 = scalar_lea.hbm %s1221_s0, %s983_s7 }
  0x3a   : > { %p1244_p6 = scmp.ge.s32.totalorder %s887_s21, 1  ;;  %s209_s25 = scalar_lea.vmem [#allocation2], %s986_s8 }
  0x3b   : > { %s216_s26 = sshll.u32 %s209_s25, 4  ;;  %s206_s12 = scalar_lea.sflag [#allocation3], %s980_s6  ;;  %s217_s26 = int_to_ptr.vmem [resolvable:$true] %s216_s26 }
  0x3c   : > { %p1042_p11 = pnand %p1244_p6, %p275_p9  ;;  %s691_s13 = scalar_lea.hbm %s1038_s14, 128 }
  0x3d   : > { %p692_p12 = scmp.ne.s32.totalorder %s1038_s14, %s691_s13  ;;  %s696_s11 = scalar_lea.hbm %s1221_s0, 256 }
  0x3e   : > { %s1245_s10 = scalar_select %p1042_p11, 1, 0 }
  0x3f   : > { %p694_p0 = pnand %p692_p12, %p1009_p2  ;;  %p697_p8 = scmp.lt.u32.totalorder %s1038_s14, %s1221_s0 }
  0x40   : > { %p698_p10 = scmp.lt.u32.totalorder %s696_s11, %s691_s13  ;;  %p700_p3 = scmp.lt.u32.totalorder %s691_s13, %s1038_s14 }
  0x41   : > { %p695_p4 = pneg %p694_p0 }
  0x42   : > { %p699_p1 = por %p698_p10, %p697_p8 }
  0x44   : > { %p701_p5 = por %p700_p3, %p699_p1 }
  0x46   : > { %p702_p7 = pnand %p701_p5, %p695_p4 }
  0x48   : > { %705 = shalt.err (!%p702_p7)
}
  0x49   : > { %s706_s25 = scalar_lea.vmem %s217_s26, 128  ;;  %s890_s20 = smov [#allocation2]  }
  0x4a   : > { %p707_p9 = scmp.ne.s32.totalorder %s217_s26, %s706_s25  ;;  %s711_s24 = sshll.u32 %s890_s20, 4  ;;  %s712_s24 = int_to_ptr.vmem [resolvable:$false] %s711_s24 }
  0x4b   : > { %s713_s15 = scalar_lea.vmem %s712_s24, 256  ;;  %p714_p0 = scmp.lt.s32.totalorder %s217_s26, %s712_s24 }
  0x4c   : > { %p709_p6 = pnand %p707_p9, %p1009_p2  ;;  %p715_p11 = scmp.lt.s32.totalorder %s713_s15, %s706_s25 }
  0x4e   : > { %p710_p12 = pneg %p709_p6  ;;  %p716_p13 = por %p715_p11, %p714_p0 }
  0x50   : > { %p717_p8 = pnand %p716_p13, %p710_p12 }
  0x52   : > { %720 = shalt.err (!%p717_p8)
}
  0x53   : > { %p1246_p10 = scmp.ne.s32.totalorder %s1241_s9, 0  ;;  %s1069_s13 = scalar_lea.hbm %s1223_s2, %s983_s7 }
  0x54   : > { %s245_s20 = scalar_lea.vmem [#allocation7], %s986_s8  ;;  %s721_s17 = scalar_lea.hbm %s1069_s13, 128 }
  0x55   : > { %610 = dma.hbm_to_vmem [thread:$0]  (!%p1246_p10), %s1038_s14, 128, %s217_s26, %s206_s12  }
  0x56   : > { %s252_s24 = sshll.u32 %s245_s20, 4  ;;  %p722_p13 = scmp.ne.s32.totalorder %s1069_s13, %s721_s17  ;;  %s253_s24 = int_to_ptr.vmem [resolvable:$true] %s252_s24 }
  0x57   : > { %s726_s14 = scalar_lea.hbm %s1223_s2, 256  ;;  %p727_p1 = scmp.lt.u32.totalorder %s1069_s13, %s1223_s2 }
  0x58   : > { %p724_p11 = pnand %p722_p13, %p1009_p2  ;;  %p728_p3 = scmp.lt.u32.totalorder %s726_s14, %s721_s17 }
  0x59   : > { %p730_p7 = scmp.lt.u32.totalorder %s721_s17, %s1069_s13 }
  0x5a   : > { %p725_p4 = pneg %p724_p11  ;;  %p729_p5 = por %p728_p3, %p727_p1 }
  0x5c   : > { %p731_p9 = por %p730_p7, %p729_p5 }
  0x5e   : > { %p732_p6 = pnand %p731_p9, %p725_p4 }
  0x60   : > { %735 = shalt.err (!%p732_p6)
}
  0x61   : > { %s736_s15 = scalar_lea.vmem %s253_s24, 128  ;;  %s891_s1 = smov [#allocation7]  }
  0x62   : > { %p737_p12 = scmp.ne.s32.totalorder %s253_s24, %s736_s15  ;;  %s741_s27 = sshll.u32 %s891_s1, 4  ;;  %s742_s27 = int_to_ptr.vmem [resolvable:$false] %s741_s27 }
  0x63   : > { %s743_s20 = scalar_lea.vmem %s742_s27, 256  ;;  %p744_p13 = scmp.lt.s32.totalorder %s253_s24, %s742_s27 }
  0x64   : > { %p739_p0 = pnand %p737_p12, %p1009_p2  ;;  %p745_p11 = scmp.lt.s32.totalorder %s743_s20, %s736_s15 }
  0x66   : > { %p740_p8 = pneg %p739_p0  ;;  %p746_p10 = por %p745_p11, %p744_p13 }
  0x68   : > { %p747_p1 = pnand %p746_p10, %p740_p8 }
  0x6a   : > { %750 = shalt.err (!%p747_p1)
}
  0x6b   : > { %p1247_p3 = scmp.ne.s32.totalorder %s1241_s9, 0  ;;  %s1094_s25 = scalar_lea.hbm %s1224_s3, %s983_s7 }
  0x6c   : > { %s263_s14 = scalar_lea.vmem [#allocation8], %s986_s8  ;;  %s260_s12 = scalar_lea.sflag [#allocation9], %s980_s6 }
  0x6d   : > { %616 = dma.hbm_to_vmem [thread:$0]  (!%p1247_p3), %s1069_s13, 128, %s253_s24, %s1003_s16  }
  0x6e   : > { %s270_s26 = sshll.u32 %s263_s14, 4  ;;  %s751_s15 = scalar_lea.hbm %s1094_s25, 128  ;;  %s271_s26 = int_to_ptr.vmem [resolvable:$true] %s270_s26 }
  0x6f   : > { %p752_p10 = scmp.ne.s32.totalorder %s1094_s25, %s751_s15  ;;  %s756_s13 = scalar_lea.hbm %s1224_s3, 256 }
  0x70   : > { %p757_p7 = scmp.lt.u32.totalorder %s1094_s25, %s1224_s3  ;;  %p758_p9 = scmp.lt.u32.totalorder %s756_s13, %s751_s15 }
  0x71   : > { %p754_p4 = pnand %p752_p10, %p1009_p2  ;;  %p760_p12 = scmp.lt.u32.totalorder %s751_s15, %s1094_s25 }
  0x72   : > { %p759_p6 = por %p758_p9, %p757_p7 }
  0x73   : > { %p755_p5 = pneg %p754_p4 }
  0x74   : > { %p761_p0 = por %p760_p12, %p759_p6 }
  0x76   : > { %p762_p8 = pnand %p761_p0, %p755_p5 }
  0x78   : > { %765 = shalt.err (!%p762_p8)
}
  0x79   : > { %s766_s6 = scalar_lea.vmem %s271_s26, 128  ;;  %s892_s8 = smov [#allocation8]  }
  0x7a   : > { %p767_p13 = scmp.ne.s32.totalorder %s271_s26, %s766_s6  ;;  %s771_s27 = sshll.u32 %s892_s8, 4  ;;  %s772_s27 = int_to_ptr.vmem [resolvable:$false] %s771_s27 }
  0x7b   : > { %s773_s20 = scalar_lea.vmem %s772_s27, 256  ;;  %p774_p10 = scmp.lt.s32.totalorder %s271_s26, %s772_s27 }
  0x7c   : > { %p769_p11 = pnand %p767_p13, %p1009_p2  ;;  %p775_p4 = scmp.lt.s32.totalorder %s773_s20, %s766_s6 }
  0x7e   : > { %p770_p1 = pneg %p769_p11  ;;  %p776_p3 = por %p775_p4, %p774_p10 }
  0x80   : > { %p777_p7 = pnand %p776_p3, %p770_p1 }
  0x82   : > { %780 = shalt.err (!%p777_p7)
}
  0x83   : > { %p1248_p9 = scmp.ne.s32.totalorder %s1241_s9, 0  ;;  %p1249_p5 = scmp.ne.s32.totalorder %s1245_s10, 0 }
  0x84   : > { %s1118_s23 = sand.u32 (!%p1249_p5), 1, %s879_s19   ;;  %p1250_p2 = scmp.ne.s32.totalorder (!%p1249_p5), %s1238_s28, 0 }
  0x85   : > { %619 = dma.hbm_to_vmem [thread:$0]  (!%p1248_p9), %s1094_s25, 128, %s271_s26, %s260_s12  }
  0x86   : > { %279 = sbr.rel (%p1249_p5) target bundleno = 198 (0xc6), region = 36  ;;  %s1121_s17 = sshll.u32 (!%p1249_p5), %s1118_s23, 3 }
  0x87   : > { %s282_s11 = scalar_lea.sflag (!%p1249_p5), [#allocation3], %s1118_s23  ;;  %s285_s14 = scalar_lea.vmem (!%p1249_p5), [#allocation2], %s1121_s17 }
  0x8d   : > { %854 = dma.done.wait (%p1250_p2), %s282_s11, 128  }
  0x8e   : > { %856 = vsyncadd (%p1250_p2), %s282_s11, 4294967168  ;;  %s290_s9 = sand.u32 1, %s946_s22   ;;  %s294_s25 = scalar_lea.vmem [#allocation5], %s1121_s17 }
  0x8f   : > { %s291_s10 = scalar_lea.sflag [#allocation6], %s290_s9 }
  0x90   : > { %858 = dma.done.wait (%p1250_p2), %s291_s10, 256  }
  0x91   : > { %860 = vsyncadd (%p1250_p2), %s291_s10, 4294967040  ;;  %s303_s26 = scalar_lea.vmem [#allocation7], %s1121_s17  ;;  %s309_s12 = scalar_lea.sflag [#allocation9], %s1118_s23 }
  0x92   : > { %s312_s15 = scalar_lea.vmem [#allocation8], %s1121_s17 }
  0x93   : > { %862 = dma.done.wait (%p1250_p2), %s309_s12, 128  }
  0x94   : > { %864 = vsyncadd (%p1250_p2), %s309_s12, 4294967168  ;;  %v359_v0 = vld [vmem:[%s285_s14] sm:$0xff]  ;;  %v360_v1 = vld [vmem:[%s294_s25] sm:$0xff]  ;;  %s351_s1 = scalar_lea.vmem [#allocation10], %s1121_s17  ;;  %s358_s13 = scalar_lea.vmem [#allocation11], %s1121_s17 }
  0x95   : > { %v361_v2 = vld [vmem:[%s303_s26] sm:$0xff]  ;;  %s390_s16 = sshll.u32 %s351_s1, 4  ;;  %s403_s24 = sshll.u32 %s358_s13, 4  ;;  %v362_v3 = vld [vmem:[%s312_s15] sm:$0xff]  ;;  %s1145_s16 = int_to_ptr.vmem [resolvable:$true] %s390_s16  ;;  %s1147_s24 = int_to_ptr.vmem [resolvable:$true] %s403_s24 }
  0x96   : > { %v363_v4 = vmul.f32 %v361_v2, %v359_v0  ;;  %v368_v5 = vmul.f32 %v361_v2, %v360_v1  ;;  %s591_s7 = sshll.u32 %s946_s22, 7  ;;  %v364_v6 = vmul.f32 %v362_v3, %v360_v1  ;;  %v367_v7 = vmul.f32 %v362_v3, %v359_v0  ;;  %s372_s17 = scalar_lea.sflag [#allocation4], %s1118_s23 }
  0x97   : > { %s1152_s8 = scalar_lea.hbm %s1225_s4, %s591_s7  ;;  %s1157_s22 = scalar_lea.hbm %s1226_s5, %s591_s7 }
  0x98   : > { %v365_v8 = vsub.f32 %v363_v4, %v364_v6  ;;  %v369_v9 = vadd.f32 %v368_v5, %v367_v7  ;;  %s781_s11 = scalar_lea.vmem %s1145_s16, 128  ;;  %p1251_p6 = scmp.ne.s32.totalorder %s1239_s29, 0 }
  0x99   : > { %p782_p3 = scmp.ne.s32.totalorder %s1145_s16, %s781_s11  ;;  %s893_s14 = smov [#allocation10]  }
  0x9a   : > { %366 = vst [vmem:[%s351_s1] sm:$0xff] %v365_v8  ;;  %370 = vst [vmem:[%s358_s13] sm:$0xff] %v369_v9  ;;  %s785_s9 = sshll.u32 %s893_s14, 4  ;;  %s786_s9 = int_to_ptr.vmem [resolvable:$false] %s785_s9 }
  0x9b   : > { %p783_p12 = pnand %p782_p3, %p1251_p6  ;;  %s787_s10 = scalar_lea.vmem %s786_s9, 256 }
  0x9c   : > { %p788_p8 = scmp.lt.s32.totalorder %s1145_s16, %s786_s9  ;;  %p789_p13 = scmp.lt.s32.totalorder %s787_s10, %s781_s11 }
  0x9d   : > { %p784_p0 = pneg %p783_p12 }
  0x9e   : > { %p790_p11 = por %p789_p13, %p788_p8 }
  0xa0   : > { %p791_p1 = pnand %p790_p11, %p784_p0 }
  0xa2   : > { %794 = shalt.err (!%p791_p1)
}
  0xa3   : > { %s795_s25 = scalar_lea.hbm %s1152_s8, 128  ;;  %s799_s15 = scalar_lea.hbm %s1225_s4, 256 }
  0xa4   : > { %p796_p10 = scmp.ne.s32.totalorder %s1152_s8, %s795_s25  ;;  %p800_p9 = scmp.lt.u32.totalorder %s1152_s8, %s1225_s4 }
  0xa5   : > { %p801_p5 = scmp.lt.u32.totalorder %s799_s15, %s795_s25  ;;  %p803_p3 = scmp.lt.u32.totalorder %s795_s25, %s1152_s8 }
  0xa6   : > { %p797_p4 = pnand %p796_p10, %p1251_p6 }
  0xa7   : > { %p802_p2 = por %p801_p5, %p800_p9 }
  0xa8   : > { %p798_p7 = pneg %p797_p4 }
  0xa9   : > { %p804_p12 = por %p803_p3, %p802_p2 }
  0xab   : > { %p805_p0 = pnand %p804_p12, %p798_p7 }
  0xad   : > { %808 = shalt.err (!%p805_p0)
}
  0xae   : > { %603 = dma.vmem_to_hbm [thread:$0]  (%p1251_p6), %s1145_s16, 128, %s1152_s8, %s372_s17  }
  0xaf   : > { %s377_s7 = scalar_lea.sflag [#allocation12], %s1118_s23  ;;  %s809_s28 = scalar_lea.vmem %s1147_s24, 128 }
  0xb0   : > { %p810_p8 = scmp.ne.s32.totalorder %s1147_s24, %s809_s28  ;;  %s894_s6 = smov [#allocation11]  }
  0xb1   : > { %s813_s27 = sshll.u32 %s894_s6, 4  ;;  %s814_s27 = int_to_ptr.vmem [resolvable:$false] %s813_s27 }
  0xb2   : > { %p811_p13 = pnand %p810_p8, %p1251_p6  ;;  %s815_s20 = scalar_lea.vmem %s814_s27, 256 }
  0xb3   : > { %p816_p1 = scmp.lt.s32.totalorder %s1147_s24, %s814_s27  ;;  %p817_p10 = scmp.lt.s32.totalorder %s815_s20, %s809_s28 }
  0xb4   : > { %p812_p11 = pneg %p811_p13 }
  0xb5   : > { %p818_p4 = por %p817_p10, %p816_p1 }
  0xb7   : > { %p819_p7 = pnand %p818_p4, %p812_p11 }
  0xb9   : > { %822 = shalt.err (!%p819_p7)
}
  0xba   : > { %s823_s23 = scalar_lea.hbm %s1157_s22, 128  ;;  %s827_s17 = scalar_lea.hbm %s1226_s5, 256 }
  0xbb   : > { %p824_p9 = scmp.ne.s32.totalorder %s1157_s22, %s823_s23  ;;  %p828_p3 = scmp.lt.u32.totalorder %s1157_s22, %s1226_s5 }
  0xbc   : > { %p829_p12 = scmp.lt.u32.totalorder %s827_s17, %s823_s23  ;;  %p831_p8 = scmp.lt.u32.totalorder %s823_s23, %s1157_s22 }
  0xbd   : > { %p825_p5 = pnand %p824_p9, %p1251_p6 }
  0xbe   : > { %p830_p0 = por %p829_p12, %p828_p3 }
  0xbf   : > { %p826_p2 = pneg %p825_p5 }
  0xc0   : > { %p832_p13 = por %p831_p8, %p830_p0 }
  0xc2   : > { %p833_p11 = pnand %p832_p13, %p826_p2 }
  0xc4   : > { %836 = shalt.err (!%p833_p11)
}
  0xc5   : > { %604 = dma.vmem_to_hbm [thread:$0]  (%p1251_p6), %s1147_s24, 128, %s1157_s22, %s377_s7  }
  0xc6 PF: > { %s415_s9 = sand.u32 1, %s875_s18   ;;  %p1252_p1 = scmp.ne.s32.totalorder %s1240_s30, 0 }
  0xc7   : > { %p1253_p10 = scmp.ge.s32.totalorder %s887_s21, 2  ;;  %s416_s10 = scalar_lea.sflag [#allocation4], %s415_s9 }
  0xc9   : > { %p621_p4 = pnand %p1253_p10, %p1252_p1 }
  0xcb   : > { %866 = dma.done.wait (!%p621_p4), %s416_s10, 128  }
  0xcc   : > { %868 = vsyncadd (!%p621_p4), %s416_s10, 4294967168  ;;  %s425_s25 = scalar_lea.sflag [#allocation12], %s415_s9 }
  0xcd   : > { %870 = dma.done.wait (!%p621_p4), %s425_s25, 128  }
  0xce   : > { %872 = vsyncadd (!%p621_p4), %s425_s25, 4294967168  ;;  %s1254_s21 = sld [smem:[#allocation19_spill]]  ;;  %s1255_s29 = sld [smem:[#allocation18_spill]] }
  0xcf   : > { %s1256_s20 = sld [smem:[#allocation20_spill]]  ;;  %s1257_s18 = smov %s879_s19 }
  0xd4   : > { %p28_p6 = scmp.ge.s32.totalorder %s1254_s21, 4   ;;  %s1258_s19 = smov %s1255_s29 }
  0xd6   :  { %30 = sbr.rel (!%p28_p6) target bundleno = 13 (0xd), region = 135 }
  0xdd   :  { %430 = vsyncpa [#allocation3], 1 }
  0xde   :  { %432 = vsyncpa [#allocation3 + $0x1], 1 }
  0xdf   :  { %433 = vsyncpa [#allocation6], 1 }
  0xe0   :  { %435 = vsyncpa [#allocation6 + $0x1], 1 }
  0xe1   :  { %436 = vsyncpa [#allocation9], 1 }
  0xe2   :  { %438 = vsyncpa [#allocation9 + $0x1], 1 }
  0xe3   :  { %439 = vsyncpa [#allocation4], 1 }
  0xe4   :  { %441 = vsyncpa [#allocation4 + $0x1], 1 }
  0xe5   :  { %442 = vsyncpa [#allocation12], 1 }
  0xe6   :  { %444 = vsyncpa [#allocation12 + $0x1], 1 }

</bundles_post_ra>
